<compile_context>
chip_gen: v5e
topology: v5e:2x2
jax: 0.10.0
libtpu: 0.0.40
codegen_flags: <defaults>
</compile_context>

<pallas_src>
import functools

import numpy as np
import jax
import jax.numpy as jnp
from jax.experimental import pallas as pl
from jax.experimental.pallas import tpu as pltpu

NEG_SLOPE = 0.01  # F.leaky_relu default


def _leaky(h):
    return jnp.where(h > 0, h, NEG_SLOPE * h)


def _round_up(x, m):
    return ((x + m - 1) // m) * m


# ----------------------------------------------------------------------------
# Single fused kernel: chain of (matmul + bias [+ leaky_relu]) layers, all
# weights/biases read from two resident lane-padded slabs.
# ----------------------------------------------------------------------------
def fused_mlp_kernel(x_ref, w_ref, b_ref, out_ref, *, layer_meta):
    h = x_ref[...]                                      # (bm, fin_pad0)
    n = len(layer_meta)
    for li, (fin_p, fout_p, off) in enumerate(layer_meta):
        # Static, 128-lane-aligned slices into the packed slabs (zero cost).
        w = w_ref[:fin_p, off:off + fout_p]             # (fin_p, fout_p)
        b = b_ref[:, off:off + fout_p]                  # (1, fout_p)
        h = jnp.dot(h, w, preferred_element_type=jnp.float32) + b
        if li < n - 1:
            h = _leaky(h)
        # dropout = identity (eval mode)
    out_ref[...] = h                                    # (bm, 128); col 0 = logit


# ----------------------------------------------------------------------------
# Host-side (one-time) parameter folding: conv/pool/flatten -> dense layers
# ----------------------------------------------------------------------------
def _pool_matrix(lin):
    """avg_pool1d(kernel=2, stride=2, padding=1, count_include_pad=True)."""
    lout = lin // 2 + 1
    P = np.zeros((lin, lout), np.float32)
    for i in range(lout):
        for j in (2 * i - 1, 2 * i):
            if 0 <= j < lin:
                P[j, i] = 0.5
    return P


def _shift_selector(ks, pa, lout, lin):
    """S[k, l, p] = 1 iff p == l + k - pa and 0 <= p < lin (conv tap selector)."""
    S = np.zeros((ks, lout, lin), np.float32)
    for k in range(ks):
        for l in range(lout):
            p = l + k - pa
            if 0 <= p < lin:
                S[k, l, p] = 1.0
    return S


def fold_params(params, inUnits):
    """Fold conv / pool / flatten structure into dense (W, b) layers."""
    ks, pa = 3, 2
    w1 = params['conv1_w']            # (c1out, cin, ks)  -- torch layout
    b1 = params['conv1_b']            # (c1out,)
    w2 = params['conv2_w']            # (c2out, c1out, ks)
    b2 = params['conv2_b']            # (c2out,)
    c1out, cin, _ = w1.shape
    c2out = w2.shape[0]

    L = inUnits
    L1 = L + 2 * pa - ks + 1          # conv1 out length
    Lp1 = L1 // 2 + 1                 # pool1 out length
    L2 = Lp1 + 2 * pa - ks + 1        # conv2 out length
    Lp2 = L2 // 2 + 1                 # pool2 out length

    S1 = jnp.asarray(_shift_selector(ks, pa, L1, L))     # (ks, L1, L)
    S2 = jnp.asarray(_shift_selector(ks, pa, L2, Lp1))   # (ks, L2, Lp1)
    P1 = jnp.asarray(_pool_matrix(L1))                   # (L1, Lp1)
    P2 = jnp.asarray(_pool_matrix(L2))                   # (L2, Lp2)

    # conv1 (with its padding) as one dense matrix on the flattened input.
    A1 = jnp.einsum('oik,klp->ipol', w1, S1).reshape(cin * L, c1out * L1)
    B1 = jnp.repeat(b1, L1)[None, :]                     # (1, c1out*L1)

    # avgpool1 + conv2 (with its padding) as one dense matrix.
    A2 = jnp.einsum('oik,klm,jm->ijol', w2, S2, P1).reshape(c1out * L1,
                                                            c2out * L2)
    B2 = jnp.repeat(b2, L2)[None, :]                     # (1, c2out*L2)

    # avgpool2 + flatten + Linear 'input' folded together.
    W0, bb0 = params['mlp'][0]                           # (c2out*Lp2, 200)
    A3 = jnp.einsum('jm,cmn->cjn', P2,
                    W0.reshape(c2out, Lp2, W0.shape[1])
                    ).reshape(c2out * L2, W0.shape[1])

    layers = [(A1, B1), (A2, B2), (A3, bb0)] + list(params['mlp'][1:])
    return layers


def pack_layers(folded_layers):
    """Pack all folded layers into one weight slab + one bias slab.

    Every fan_in / fan_out is zero-padded to a multiple of 128 (exact:
    leaky(0)=0 and zero rows/cols contribute nothing), and each layer's
    weight is placed at a 128-aligned lane offset so the kernel can slice it
    statically.  Returns (w_slab, b_slab, layer_meta) with
    layer_meta = tuple of (fan_in_padded, fan_out_padded, lane_offset).
    """
    metas = []
    off = 0
    for W, _ in folded_layers:
        fin, fout = int(W.shape[0]), int(W.shape[1])
        fin_p = _round_up(fin, 128)
        fout_p = _round_up(fout, 128)
        metas.append((fin_p, fout_p, off))
        off += fout_p
    W_total = off
    max_fin = max(m[0] for m in metas)

    w_slab = np.zeros((max_fin, W_total), np.float32)
    b_slab = np.zeros((1, W_total), np.float32)
    for (W, b), (fin_p, fout_p, o) in zip(folded_layers, metas):
        fin, fout = int(W.shape[0]), int(W.shape[1])
        w_slab[:fin, o:o + fout] = np.asarray(W, np.float32)
        b_slab[0, o:o + fout] = np.asarray(b, np.float32).reshape(-1)
    return jnp.asarray(w_slab), jnp.asarray(b_slab), tuple(metas)


# ----------------------------------------------------------------------------
# Forward: one pallas_call for the whole network
# ----------------------------------------------------------------------------
def _choose_bm(B):
    # Resident footprint (packed weights ~1.5 MiB + a (bm, 256) activation) is
    # tiny compared to VMEM on every generation, so bm is tuned purely for
    # per-step overhead and (on v7x) megacore occupancy.
    if B <= 256:
        return _round_up(B, 8)                     # single grid step
    # Large batch: at least 2 "parallel" grid steps so both v7x TensorCores
    # get work; cap tile at 512 rows to avoid vreg pressure on the ~256-wide
    # activations.
    return min(512, _round_up((B + 1) // 2, 128))


def cnn_class_o_forward(x, packed, *, bm=None):
    w_slab, b_slab, layer_meta = packed
    B, cin, L = x.shape
    fin0 = layer_meta[0][0]
    fout_last = layer_meta[-1][1]

    if bm is None:
        bm = _choose_bm(B)
    Bp = _round_up(B, bm)

    xflat = x.reshape(B, cin * L)                        # free reshape (NCL)
    x_pad = jnp.zeros((Bp, fin0), jnp.float32).at[:B, :cin * L].set(xflat)

    flops = 2 * Bp * sum(fi * fo for fi, fo, _ in layer_meta)
    bytes_accessed = 4 * (x_pad.size + int(w_slab.size) + int(b_slab.size)
                          + Bp * fout_last)

    out = pl.pallas_call(
        functools.partial(fused_mlp_kernel, layer_meta=layer_meta),
        out_shape=jax.ShapeDtypeStruct((Bp, fout_last), jnp.float32),
        grid=(Bp // bm,),
        in_specs=[
            pl.BlockSpec((bm, fin0), lambda i: (i, 0)),      # batch tile
            pl.BlockSpec(w_slab.shape, lambda i: (0, 0)),    # weight slab (resident)
            pl.BlockSpec(b_slab.shape, lambda i: (0, 0)),    # bias slab (resident)
        ],
        out_specs=pl.BlockSpec((bm, fout_last), lambda i: (i, 0)),
        compiler_params=pltpu.CompilerParams(
            dimension_semantics=("parallel",)),
        cost_estimate=pl.CostEstimate(flops=flops, transcendentals=0,
                                      bytes_accessed=bytes_accessed),
    )(x_pad, w_slab, b_slab)
    return out[:B, :1]


# ----------------------------------------------------------------------------
# Deterministic parameter init (shapes from CNNclassO.__init__, torch layout)
# ----------------------------------------------------------------------------
def init_params(key, inUnits, nUnits, nLayers):
    ks, pa = 3, 2
    l1, l2 = 6, 12
    a = inUnits + 2 * pa - ks + 1
    ouA = a // 2 + 1
    b = ouA + 2 * pa - ks + 1
    ouB = b // 2 + 1
    infc = ouB * l2

    sizes = ([(infc, 200), (200, nUnits)]
             + [(nUnits, nUnits)] * nLayers
             + [(nUnits, 50), (50, 50), (50, 1)])

    keys = iter(jax.random.split(key, 4 + 2 * len(sizes)))

    def unif(k, shape, fan_in):
        bound = 1.0 / np.sqrt(fan_in)
        return jax.random.uniform(k, shape, jnp.float32, -bound, bound)

    params = {
        'conv1_w': unif(next(keys), (l1, 3, ks), 3 * ks),
        'conv1_b': unif(next(keys), (l1,), 3 * ks),
        'conv2_w': unif(next(keys), (l2, l1, ks), l1 * ks),
        'conv2_b': unif(next(keys), (l2,), l1 * ks),
    }
    mlp = []
    for fin, fout in sizes:
        W = unif(next(keys), (fin, fout), fin)
        bb = unif(next(keys), (1, fout), fin)
        mlp.append((W, bb))
    params['mlp'] = mlp
    return params


# ----------------------------------------------------------------------------
# Pure-JAX reference (unfused), for correctness check
# ----------------------------------------------------------------------------
def reference_forward(x, params):
    h = jax.lax.conv_general_dilated(x, params['conv1_w'], (1,), ((2, 2),),
                                     dimension_numbers=('NCH', 'OIH', 'NCH'))
    h = _leaky(h + params['conv1_b'][None, :, None])
    h = jax.lax.reduce_window(h, 0.0, jax.lax.add, (1, 1, 2), (1, 1, 2),
                              ((0, 0), (0, 0), (1, 1))) * 0.5
    h = jax.lax.conv_general_dilated(h, params['conv2_w'], (1,), ((2, 2),),
                                     dimension_numbers=('NCH', 'OIH', 'NCH'))
    h = _leaky(h + params['conv2_b'][None, :, None])
    h = jax.lax.reduce_window(h, 0.0, jax.lax.add, (1, 1, 2), (1, 1, 2),
                              ((0, 0), (0, 0), (1, 1))) * 0.5
    h = h.reshape(x.shape[0], -1)
    mlp = params['mlp']
    for i, (W, b) in enumerate(mlp):
        h = h @ W + b
        if i < len(mlp) - 1:
            h = _leaky(h)
    return h


if __name__ == "__main__":
    selfdr, nUnits, nLayers, inUnits = 0.25, 32, 2, 16
    B = 2

    key = jax.random.PRNGKey(0)
    kparams, kx = jax.random.split(key)
    params = init_params(kparams, inUnits, nUnits, nLayers)
    x = jax.random.normal(kx, (B, 3, inUnits), jnp.float32)

    # One-time parameter folding + packing into two lane-padded slabs.
    folded = fold_params(params, inUnits)
    w_slab, b_slab, layer_meta = pack_layers(folded)
    w_slab = jax.block_until_ready(w_slab)
    b_slab = jax.block_until_ready(b_slab)
    packed = (w_slab, b_slab, layer_meta)

    out = cnn_class_o_forward(x, packed)
    out = jax.block_until_ready(out)

    ref = reference_forward(x, params)
    np.testing.assert_allclose(np.asarray(out), np.asarray(ref),
                               rtol=1e-4, atol=1e-4)
    print("KERNEL_OK")
</pallas_src>

<mosaic_0001>
module attributes {stable_mosaic.version = 11 : i64} {
  func.func @fused_mlp_kernel(%arg0: i32, %arg1: memref<8x128xf32, #tpu.memory_space<vmem>>, %arg2: memref<256x1408xf32, #tpu.memory_space<vmem>>, %arg3: memref<1x1408xf32, #tpu.memory_space<vmem>>, %arg4: memref<8x128xf32, #tpu.memory_space<vmem>>) attributes {dimension_semantics = [#tpu.dimension_semantics<parallel>], iteration_bounds = array<i64: 1>, scalar_prefetch = 0 : i64, scratch_operands = 0 : i64, tpu.core_type = #tpu.core_type<tc>, window_params = [{transform_indices = @transform_0, window_bounds = array<i64: 8, 128>}, {pipeline_mode = #tpu.pipeline_mode<synchronous>, transform_indices = @transform_1, window_bounds = array<i64: 256, 1408>}, {pipeline_mode = #tpu.pipeline_mode<synchronous>, transform_indices = @transform_2, window_bounds = array<i64: 1, 1408>}, {transform_indices = @transform_3, window_bounds = array<i64: 8, 128>}]} {
    %c0 = arith.constant 0 : index
    %c0_0 = arith.constant 0 : index
    %0 = vector.load %arg1[%c0, %c0_0] : memref<8x128xf32, #tpu.memory_space<vmem>>, vector<8x128xf32>
    %c0_1 = arith.constant 0 : index
    %c0_2 = arith.constant 0 : index
    %1 = vector.load %arg2[%c0_1, %c0_2] : memref<256x1408xf32, #tpu.memory_space<vmem>>, vector<128x128xf32>
    %c0_3 = arith.constant 0 : index
    %c0_4 = arith.constant 0 : index
    %2 = vector.load %arg3[%c0_3, %c0_4] : memref<1x1408xf32, #tpu.memory_space<vmem>>, vector<1x128xf32>
    %cst = arith.constant dense<0.000000e+00> : vector<8x128xf32>
    %3 = tpu.matmul %0, %1, %cst {dimension_numbers = #tpu.dot_dimension_numbers<[1], [0], [0], [1], [0, 0, 1, 1], [], []>} : vector<8x128xf32>, vector<128x128xf32>, vector<8x128xf32> -> vector<8x128xf32>
    %4 = vector.broadcast %2 : vector<1x128xf32> to vector<8x128xf32>
    %5 = arith.addf %3, %4 : vector<8x128xf32>
    %cst_5 = arith.constant 0.000000e+00 : f32
    %6 = vector.broadcast %cst_5 : f32 to vector<8x128xf32>
    %7 = arith.cmpf ogt, %5, %6 : vector<8x128xf32>
    %cst_6 = arith.constant 0.00999999977 : f32
    %8 = vector.broadcast %cst_6 : f32 to vector<8x128xf32>
    %9 = arith.mulf %8, %5 : vector<8x128xf32>
    %10 = arith.select %7, %5, %9 : vector<8x128xi1>, vector<8x128xf32>
    %c0_7 = arith.constant 0 : index
    %c128 = arith.constant 128 : index
    %11 = vector.load %arg2[%c0_7, %c128] : memref<256x1408xf32, #tpu.memory_space<vmem>>, vector<128x256xf32>
    %c0_8 = arith.constant 0 : index
    %c128_9 = arith.constant 128 : index
    %12 = vector.load %arg3[%c0_8, %c128_9] : memref<1x1408xf32, #tpu.memory_space<vmem>>, vector<1x256xf32>
    %cst_10 = arith.constant dense<0.000000e+00> : vector<8x256xf32>
    %13 = tpu.matmul %10, %11, %cst_10 {dimension_numbers = #tpu.dot_dimension_numbers<[1], [0], [0], [1], [0, 0, 1, 1], [], []>} : vector<8x128xf32>, vector<128x256xf32>, vector<8x256xf32> -> vector<8x256xf32>
    %14 = vector.broadcast %12 : vector<1x256xf32> to vector<8x256xf32>
    %15 = arith.addf %13, %14 : vector<8x256xf32>
    %cst_11 = arith.constant 0.000000e+00 : f32
    %16 = vector.broadcast %cst_11 : f32 to vector<8x256xf32>
    %17 = arith.cmpf ogt, %15, %16 : vector<8x256xf32>
    %cst_12 = arith.constant 0.00999999977 : f32
    %18 = vector.broadcast %cst_12 : f32 to vector<8x256xf32>
    %19 = arith.mulf %18, %15 : vector<8x256xf32>
    %20 = arith.select %17, %15, %19 : vector<8x256xi1>, vector<8x256xf32>
    %c0_13 = arith.constant 0 : index
    %c384 = arith.constant 384 : index
    %21 = vector.load %arg2[%c0_13, %c384] : memref<256x1408xf32, #tpu.memory_space<vmem>>, vector<256x256xf32>
    %c0_14 = arith.constant 0 : index
    %c384_15 = arith.constant 384 : index
    %22 = vector.load %arg3[%c0_14, %c384_15] : memref<1x1408xf32, #tpu.memory_space<vmem>>, vector<1x256xf32>
    %cst_16 = arith.constant dense<0.000000e+00> : vector<8x256xf32>
    %23 = tpu.matmul %20, %21, %cst_16 {dimension_numbers = #tpu.dot_dimension_numbers<[1], [0], [0], [1], [0, 0, 1, 1], [], []>} : vector<8x256xf32>, vector<256x256xf32>, vector<8x256xf32> -> vector<8x256xf32>
    %24 = vector.broadcast %22 : vector<1x256xf32> to vector<8x256xf32>
    %25 = arith.addf %23, %24 : vector<8x256xf32>
    %cst_17 = arith.constant 0.000000e+00 : f32
    %26 = vector.broadcast %cst_17 : f32 to vector<8x256xf32>
    %27 = arith.cmpf ogt, %25, %26 : vector<8x256xf32>
    %cst_18 = arith.constant 0.00999999977 : f32
    %28 = vector.broadcast %cst_18 : f32 to vector<8x256xf32>
    %29 = arith.mulf %28, %25 : vector<8x256xf32>
    %30 = arith.select %27, %25, %29 : vector<8x256xi1>, vector<8x256xf32>
    %c0_19 = arith.constant 0 : index
    %c640 = arith.constant 640 : index
    %31 = vector.load %arg2[%c0_19, %c640] : memref<256x1408xf32, #tpu.memory_space<vmem>>, vector<256x128xf32>
    %c0_20 = arith.constant 0 : index
    %c640_21 = arith.constant 640 : index
    %32 = vector.load %arg3[%c0_20, %c640_21] : memref<1x1408xf32, #tpu.memory_space<vmem>>, vector<1x128xf32>
    %cst_22 = arith.constant dense<0.000000e+00> : vector<8x128xf32>
    %33 = tpu.matmul %30, %31, %cst_22 {dimension_numbers = #tpu.dot_dimension_numbers<[1], [0], [0], [1], [0, 0, 1, 1], [], []>} : vector<8x256xf32>, vector<256x128xf32>, vector<8x128xf32> -> vector<8x128xf32>
    %34 = vector.broadcast %32 : vector<1x128xf32> to vector<8x128xf32>
    %35 = arith.addf %33, %34 : vector<8x128xf32>
    %cst_23 = arith.constant 0.000000e+00 : f32
    %36 = vector.broadcast %cst_23 : f32 to vector<8x128xf32>
    %37 = arith.cmpf ogt, %35, %36 : vector<8x128xf32>
    %cst_24 = arith.constant 0.00999999977 : f32
    %38 = vector.broadcast %cst_24 : f32 to vector<8x128xf32>
    %39 = arith.mulf %38, %35 : vector<8x128xf32>
    %40 = arith.select %37, %35, %39 : vector<8x128xi1>, vector<8x128xf32>
    %c0_25 = arith.constant 0 : index
    %c768 = arith.constant 768 : index
    %41 = vector.load %arg2[%c0_25, %c768] : memref<256x1408xf32, #tpu.memory_space<vmem>>, vector<128x128xf32>
    %c0_26 = arith.constant 0 : index
    %c768_27 = arith.constant 768 : index
    %42 = vector.load %arg3[%c0_26, %c768_27] : memref<1x1408xf32, #tpu.memory_space<vmem>>, vector<1x128xf32>
    %cst_28 = arith.constant dense<0.000000e+00> : vector<8x128xf32>
    %43 = tpu.matmul %40, %41, %cst_28 {dimension_numbers = #tpu.dot_dimension_numbers<[1], [0], [0], [1], [0, 0, 1, 1], [], []>} : vector<8x128xf32>, vector<128x128xf32>, vector<8x128xf32> -> vector<8x128xf32>
    %44 = vector.broadcast %42 : vector<1x128xf32> to vector<8x128xf32>
    %45 = arith.addf %43, %44 : vector<8x128xf32>
    %cst_29 = arith.constant 0.000000e+00 : f32
    %46 = vector.broadcast %cst_29 : f32 to vector<8x128xf32>
    %47 = arith.cmpf ogt, %45, %46 : vector<8x128xf32>
    %cst_30 = arith.constant 0.00999999977 : f32
    %48 = vector.broadcast %cst_30 : f32 to vector<8x128xf32>
    %49 = arith.mulf %48, %45 : vector<8x128xf32>
    %50 = arith.select %47, %45, %49 : vector<8x128xi1>, vector<8x128xf32>
    %c0_31 = arith.constant 0 : index
    %c896 = arith.constant 896 : index
    %51 = vector.load %arg2[%c0_31, %c896] : memref<256x1408xf32, #tpu.memory_space<vmem>>, vector<128x128xf32>
    %c0_32 = arith.constant 0 : index
    %c896_33 = arith.constant 896 : index
    %52 = vector.load %arg3[%c0_32, %c896_33] : memref<1x1408xf32, #tpu.memory_space<vmem>>, vector<1x128xf32>
    %cst_34 = arith.constant dense<0.000000e+00> : vector<8x128xf32>
    %53 = tpu.matmul %50, %51, %cst_34 {dimension_numbers = #tpu.dot_dimension_numbers<[1], [0], [0], [1], [0, 0, 1, 1], [], []>} : vector<8x128xf32>, vector<128x128xf32>, vector<8x128xf32> -> vector<8x128xf32>
    %54 = vector.broadcast %52 : vector<1x128xf32> to vector<8x128xf32>
    %55 = arith.addf %53, %54 : vector<8x128xf32>
    %cst_35 = arith.constant 0.000000e+00 : f32
    %56 = vector.broadcast %cst_35 : f32 to vector<8x128xf32>
    %57 = arith.cmpf ogt, %55, %56 : vector<8x128xf32>
    %cst_36 = arith.constant 0.00999999977 : f32
    %58 = vector.broadcast %cst_36 : f32 to vector<8x128xf32>
    %59 = arith.mulf %58, %55 : vector<8x128xf32>
    %60 = arith.select %57, %55, %59 : vector<8x128xi1>, vector<8x128xf32>
    %c0_37 = arith.constant 0 : index
    %c1024 = arith.constant 1024 : index
    %61 = vector.load %arg2[%c0_37, %c1024] : memref<256x1408xf32, #tpu.memory_space<vmem>>, vector<128x128xf32>
    %c0_38 = arith.constant 0 : index
    %c1024_39 = arith.constant 1024 : index
    %62 = vector.load %arg3[%c0_38, %c1024_39] : memref<1x1408xf32, #tpu.memory_space<vmem>>, vector<1x128xf32>
    %cst_40 = arith.constant dense<0.000000e+00> : vector<8x128xf32>
    %63 = tpu.matmul %60, %61, %cst_40 {dimension_numbers = #tpu.dot_dimension_numbers<[1], [0], [0], [1], [0, 0, 1, 1], [], []>} : vector<8x128xf32>, vector<128x128xf32>, vector<8x128xf32> -> vector<8x128xf32>
    %64 = vector.broadcast %62 : vector<1x128xf32> to vector<8x128xf32>
    %65 = arith.addf %63, %64 : vector<8x128xf32>
    %cst_41 = arith.constant 0.000000e+00 : f32
    %66 = vector.broadcast %cst_41 : f32 to vector<8x128xf32>
    %67 = arith.cmpf ogt, %65, %66 : vector<8x128xf32>
    %cst_42 = arith.constant 0.00999999977 : f32
    %68 = vector.broadcast %cst_42 : f32 to vector<8x128xf32>
    %69 = arith.mulf %68, %65 : vector<8x128xf32>
    %70 = arith.select %67, %65, %69 : vector<8x128xi1>, vector<8x128xf32>
    %c0_43 = arith.constant 0 : index
    %c1152 = arith.constant 1152 : index
    %71 = vector.load %arg2[%c0_43, %c1152] : memref<256x1408xf32, #tpu.memory_space<vmem>>, vector<128x128xf32>
    %c0_44 = arith.constant 0 : index
    %c1152_45 = arith.constant 1152 : index
    %72 = vector.load %arg3[%c0_44, %c1152_45] : memref<1x1408xf32, #tpu.memory_space<vmem>>, vector<1x128xf32>
    %cst_46 = arith.constant dense<0.000000e+00> : vector<8x128xf32>
    %73 = tpu.matmul %70, %71, %cst_46 {dimension_numbers = #tpu.dot_dimension_numbers<[1], [0], [0], [1], [0, 0, 1, 1], [], []>} : vector<8x128xf32>, vector<128x128xf32>, vector<8x128xf32> -> vector<8x128xf32>
    %74 = vector.broadcast %72 : vector<1x128xf32> to vector<8x128xf32>
    %75 = arith.addf %73, %74 : vector<8x128xf32>
    %cst_47 = arith.constant 0.000000e+00 : f32
    %76 = vector.broadcast %cst_47 : f32 to vector<8x128xf32>
    %77 = arith.cmpf ogt, %75, %76 : vector<8x128xf32>
    %cst_48 = arith.constant 0.00999999977 : f32
    %78 = vector.broadcast %cst_48 : f32 to vector<8x128xf32>
    %79 = arith.mulf %78, %75 : vector<8x128xf32>
    %80 = arith.select %77, %75, %79 : vector<8x128xi1>, vector<8x128xf32>
    %c0_49 = arith.constant 0 : index
    %c1280 = arith.constant 1280 : index
    %81 = vector.load %arg2[%c0_49, %c1280] : memref<256x1408xf32, #tpu.memory_space<vmem>>, vector<128x128xf32>
    %c0_50 = arith.constant 0 : index
    %c1280_51 = arith.constant 1280 : index
    %82 = vector.load %arg3[%c0_50, %c1280_51] : memref<1x1408xf32, #tpu.memory_space<vmem>>, vector<1x128xf32>
    %cst_52 = arith.constant dense<0.000000e+00> : vector<8x128xf32>
    %83 = tpu.matmul %80, %81, %cst_52 {dimension_numbers = #tpu.dot_dimension_numbers<[1], [0], [0], [1], [0, 0, 1, 1], [], []>} : vector<8x128xf32>, vector<128x128xf32>, vector<8x128xf32> -> vector<8x128xf32>
    %84 = vector.broadcast %82 : vector<1x128xf32> to vector<8x128xf32>
    %85 = arith.addf %83, %84 : vector<8x128xf32>
    %c0_53 = arith.constant 0 : index
    %c0_54 = arith.constant 0 : index
    %86 = vector.load %arg4[%c0_53, %c0_54] : memref<8x128xf32, #tpu.memory_space<vmem>>, vector<8x128xf32>
    tpu.vector_store %arg4[%c0_53, %c0_54], %85 {strides = array<i32>} : memref<8x128xf32, #tpu.memory_space<vmem>>, vector<8x128xf32>,
    return
  }
  func.func @transform_0(%arg0: i32) -> (i32, i32) {
    %c0_i32 = arith.constant 0 : i32
    %c0_i32_0 = arith.constant 0 : i32
    return %arg0, %c0_i32 : i32, i32
  }
  func.func @transform_1(%arg0: i32) -> (i32, i32) {
    %c0_i32 = arith.constant 0 : i32
    %c0_i32_0 = arith.constant 0 : i32
    %c0_i32_1 = arith.constant 0 : i32
    return %c0_i32, %c0_i32_0 : i32, i32
  }
  func.func @transform_2(%arg0: i32) -> (i32, i32) {
    %c0_i32 = arith.constant 0 : i32
    %c0_i32_0 = arith.constant 0 : i32
    %c0_i32_1 = arith.constant 0 : i32
    return %c0_i32, %c0_i32_0 : i32, i32
  }
  func.func @transform_3(%arg0: i32) -> (i32, i32) {
    %c0_i32 = arith.constant 0 : i32
    %c0_i32_0 = arith.constant 0 : i32
    return %arg0, %c0_i32 : i32, i32
  }
}

</mosaic_0001>

<bundles_post_ra>
// kernel: tpu_custom_call.1
= control target key start
LH: loop header
LB: loop body
LE: loop exit
PB: predicated region body
PF: predicated region fallthrough
CT: control target
= control target key end

     0   :  { %8 = vsyncpa [#allocation3], 0  ;;  %s805_s0 = inlined_call_operand.hbm [shape: f32[8,128], index: 0, kind: input, shape index: {}]   ;;  %s806_s1 = inlined_call_operand.hbm [shape: f32[256,1408], index: 1, kind: input, shape index: {}]   ;;  %s807_s2 = inlined_call_operand.hbm [shape: f32[1,1408], index: 2, kind: input, shape index: {}]   ;;  %s808_s3 = inlined_call_operand.hbm [shape: f32[8,128], index: 3, kind: output, shape index: {}]  }
   0x1   :  { %9 = vsyncpa [#allocation6], 0  ;;  %s26_s14 = sshll.u32 %s806_s1, 4  ;;  %s27_s14 = int_to_ptr.hbm [resolvable:$true] %s26_s14 }
   0x2   :  { %10 = vsyncpa [#allocation4], 0  ;;  %s767_s15 = smov [#allocation5]   ;;  %s16_s19 = sshll.u32 %s805_s0, 4  ;;  %s17_s19 = int_to_ptr.hbm [resolvable:$true] %s16_s19 }
   0x3   :  { %s28_s16 = sshll.u32 %s767_s15, 4  ;;  %s768_s20 = smov 1408   ;;  %s29_s16 = int_to_ptr.vmem [resolvable:$true] %s28_s16 }
   0x4   :  { %s769_s21 = smov 88   ;;  %s770_s22 = smov [#allocation2]  }
   0x5   :  { %34 = dma.hbm_to_vmem [thread:$0]  %s27_s14, 45056, %s29_s16, [#allocation6], %s768_s20, %s768_s20, %s769_s21  }
   0x6   :  { %s18_s23 = sshll.u32 %s770_s22, 4  ;;  %s40_s26 = sshll.u32 %s807_s2, 4  ;;  %s19_s23 = int_to_ptr.vmem [resolvable:$true] %s18_s23  ;;  %s41_s26 = int_to_ptr.hbm [resolvable:$true] %s40_s26 }
   0x7   :  { %21 = dma.hbm_to_vmem [thread:$0]  %s17_s19, 128, %s19_s23, [#allocation3]  }
   0x8   :  { %s771_s1 = smov [#allocation7]  }
   0x9   :  { %s42_s27 = sshll.u32 %s771_s1, 4  ;;  %s43_s27 = int_to_ptr.vmem [resolvable:$true] %s42_s27 }
   0xa   :  { %45 = dma.hbm_to_vmem [thread:$0]  %s41_s26, 176, %s43_s27, [#allocation6]  }
   0xb   :  { %761 = dma.done.wait [#allocation3], 128  }
   0xc   :  { %762 = vsyncadd [#allocation3], 4294967168 }
   0xd   :  { %763 = dma.done.wait [#allocation6], 45232  }
   0xe   :  { %764 = vsyncadd [#allocation6], 4294922064  ;;  %v74_v0 = vld [vmem:[#allocation5 + $0x528] sm:$0xff]  ;;  %v73_v1 = vld [vmem:[#allocation5 + $0x4d0] sm:$0xff]  ;;  %s772_s0 = smov [#allocation8]   ;;  %s641_s30 = sshll.u32 %s808_s3, 4  ;;  %s642_s30 = int_to_ptr.hbm [resolvable:$true] %s641_s30 }
   0xf   :  { %79 = vmatpush.msra.mxu0 %v74_v0  ;;  %v72_v2 = vld [vmem:[#allocation5 + $0x478] sm:$0xff]  ;;  %v71_v3 = vld [vmem:[#allocation5 + $0x420] sm:$0xff]  ;;  %v70_v4 = vld [vmem:[#allocation5 + $0x3c8] sm:$0xff]  ;;  %s639_s2 = sshll.u32 %s772_s0, 4  ;;  %s640_s2 = int_to_ptr.vmem [resolvable:$true] %s639_s2 }
  0x10   :  { %v132_v5 = vld [vmem:[#allocation5 + $0x530] sm:$0xff]  ;;  %v133_v6 = vld [vmem:[#allocation5 + $0x538] sm:$0xff]  ;;  %v131_v8 = vld [vmem:[#allocation5 + $0x4e0] sm:$0xff] }
  0x11   :  { %80 = vmatpush.msra.mxu0 %v73_v1  ;;  %140 = vmatpush.msra.mxu1 %v132_v5  ;;  %v130_v7 = vld [vmem:[#allocation5 + $0x4d8] sm:$0xff]  ;;  %v128_v9 = vld [vmem:[#allocation5 + $0x480] sm:$0xff]  ;;  %v69_v10 = vld [vmem:[#allocation5 + $0x370] sm:$0xff] }
  0x12   :  { %160 = vmatpush.msra.mxu2 %v133_v6  ;;  %v129_v11 = vld [vmem:[#allocation5 + $0x488] sm:$0xff]  ;;  %v68_v13 = vld [vmem:[#allocation5 + $0x318] sm:$0xff]  ;;  %v127_v14 = vld [vmem:[#allocation5 + $0x430] sm:$0xff] }
  0x13   :  { %81 = vmatpush.msra.mxu0 %v72_v2  ;;  %141 = vmatpush.msra.mxu1 %v130_v7  ;;  %v126_v12 = vld [vmem:[#allocation5 + $0x428] sm:$0xff]  ;;  %v124_v15 = vld [vmem:[#allocation5 + $0x3d0] sm:$0xff]  ;;  %v67_v16 = vld [vmem:[#allocation5 + $0x2c0] sm:$0xff] }
  0x14   :  { %161 = vmatpush.msra.mxu2 %v131_v8  ;;  %v125_v17 = vld [vmem:[#allocation5 + $0x3d8] sm:$0xff]  ;;  %v66_v18 = vld [vmem:[#allocation5 + $0x268] sm:$0xff]  ;;  %v123_v20 = vld [vmem:[#allocation5 + $0x380] sm:$0xff] }
  0x15   :  { %82 = vmatpush.msra.mxu0 %v71_v3  ;;  %142 = vmatpush.msra.mxu1 %v128_v9  ;;  %v122_v19 = vld [vmem:[#allocation5 + $0x378] sm:$0xff]  ;;  %v65_v21 = vld [vmem:[#allocation5 + $0x210] sm:$0xff]  ;;  %v120_v22 = vld [vmem:[#allocation5 + $0x320] sm:$0xff] }
  0x16   :  { %162 = vmatpush.msra.mxu2 %v129_v11  ;;  %v121_v23 = vld [vmem:[#allocation5 + $0x328] sm:$0xff]  ;;  %v64_v25 = vld [vmem:[#allocation5 + $0x1b8] sm:$0xff]  ;;  %v119_v26 = vld [vmem:[#allocation5 + $0x2d0] sm:$0xff] }
  0x17   :  { %83 = vmatpush.msra.mxu0 %v70_v4  ;;  %143 = vmatpush.msra.mxu1 %v126_v12  ;;  %v118_v24 = vld [vmem:[#allocation5 + $0x2c8] sm:$0xff]  ;;  %v116_v27 = vld [vmem:[#allocation5 + $0x270] sm:$0xff]  ;;  %v63_v28 = vld [vmem:[#allocation5 + $0x160] sm:$0xff] }
  0x18   :  { %163 = vmatpush.msra.mxu2 %v127_v14  ;;  %v117_v29 = vld [vmem:[#allocation5 + $0x278] sm:$0xff]  ;;  %v62_v31 = vld [vmem:[#allocation5 + $0x108] sm:$0xff]  ;;  %v115_v32 = vld [vmem:[#allocation5 + $0x220] sm:$0xff] }
  0x19   :  { %84 = vmatpush.msra.mxu0 %v69_v10  ;;  %144 = vmatpush.msra.mxu1 %v124_v15  ;;  %v114_v30 = vld [vmem:[#allocation5 + $0x218] sm:$0xff]  ;;  %v112_v33 = vld [vmem:[#allocation5 + $0x1c0] sm:$0xff]  ;;  %v61_v34 = vld [vmem:[#allocation5 + $0xb0] sm:$0xff] }
  0x1a   :  { %164 = vmatpush.msra.mxu2 %v125_v17  ;;  %v113_v35 = vld [vmem:[#allocation5 + $0x1c8] sm:$0xff]  ;;  %v60_v37 = vld [vmem:[#allocation5 + $0x58] sm:$0xff]  ;;  %v111_v38 = vld [vmem:[#allocation5 + $0x170] sm:$0xff] }
  0x1b   :  { %85 = vmatpush.msra.mxu0 %v68_v13  ;;  %145 = vmatpush.msra.mxu1 %v122_v19  ;;  %v110_v36 = vld [vmem:[#allocation5 + $0x168] sm:$0xff]  ;;  %v108_v39 = vld [vmem:[#allocation5 + $0x110] sm:$0xff]  ;;  %v59_v40 = vld [vmem:[#allocation5] sm:$0xff] }
  0x1c   :  { %165 = vmatpush.msra.mxu2 %v123_v20  ;;  %v109_v41 = vld [vmem:[#allocation5 + $0x118] sm:$0xff]  ;;  %v107_v44 = vld [vmem:[#allocation5 + $0xc0] sm:$0xff]  ;;  %v105_v46 = vld [vmem:[#allocation5 + $0x68] sm:$0xff] }
  0x1d   :  { %86 = vmatpush.msra.mxu0 %v67_v16  ;;  %146 = vmatpush.msra.mxu1 %v120_v22  ;;  %v58_v42 = vld [vmem:[#allocation2] sm:$0xff]  ;;  %v104_v45 = vld [vmem:[#allocation5 + $0x60] sm:$0xff]  ;;  %v102_v47 = vld [vmem:[#allocation5 + $0x8] sm:$0xff] }
  0x1e   :  { %166 = vmatpush.msra.mxu2 %v121_v23  ;;  %v106_v43 = vld [vmem:[#allocation5 + $0xb8] sm:$0xff]  ;;  %v103_v48 = vld [vmem:[#allocation5 + $0x10] sm:$0xff]  ;;  %v216_v49 = vld [vmem:[#allocation5 + $0x540] sm:$0xff] }
  0x1f   :  { %87 = vmatpush.msra.mxu0 %v66_v18  ;;  %147 = vmatpush.msra.mxu1 %v118_v24  ;;  %v217_v50 = vld [vmem:[#allocation5 + $0x548] sm:$0xff]  ;;  %v215_v52 = vld [vmem:[#allocation5 + $0x4f0] sm:$0xff]  ;;  %v213_v54 = vld [vmem:[#allocation5 + $0x498] sm:$0xff] }
  0x20   :  { %167 = vmatpush.msra.mxu2 %v119_v26  ;;  %v214_v51 = vld [vmem:[#allocation5 + $0x4e8] sm:$0xff]  ;;  %256 = vmatpush.msra.mxu3 %v216_v49  ;;  %v212_v53 = vld [vmem:[#allocation5 + $0x490] sm:$0xff]  ;;  %v248_v55 = vld [vmem:[#allocation5 + $0xac0] sm:$0xff] }
  0x21   :  { %88 = vmatpush.msra.mxu0 %v65_v21  ;;  %148 = vmatpush.msra.mxu1 %v116_v27  ;;  %v249_v56 = vld [vmem:[#allocation5 + $0xac8] sm:$0xff]  ;;  %v210_v58 = vld [vmem:[#allocation5 + $0x438] sm:$0xff]  ;;  %v211_v59 = vld [vmem:[#allocation5 + $0x440] sm:$0xff] }
  0x22   :  { %168 = vmatpush.msra.mxu2 %v117_v29  ;;  %257 = vmatpush.msra.mxu3 %v214_v51  ;;  %v246_v57 = vld [vmem:[#allocation5 + $0xa68] sm:$0xff]  ;;  %v247_v60 = vld [vmem:[#allocation5 + $0xa70] sm:$0xff]  ;;  %v245_v62 = vld [vmem:[#allocation5 + $0xa18] sm:$0xff] }
  0x23   :  { %89 = vmatpush.msra.mxu0 %v64_v25  ;;  %149 = vmatpush.msra.mxu1 %v114_v30  ;;  %v244_v61 = vld [vmem:[#allocation5 + $0xa10] sm:$0xff]  ;;  %v208_v63 = vld [vmem:[#allocation5 + $0x3e0] sm:$0xff]  ;;  %v209_v0 = vld [vmem:[#allocation5 + $0x3e8] sm:$0xff] }
  0x24   :  { %169 = vmatpush.msra.mxu2 %v115_v32  ;;  %258 = vmatpush.msra.mxu3 %v212_v53  ;;  %v242_v1 = vld [vmem:[#allocation5 + $0x9b8] sm:$0xff]  ;;  %v243_v2 = vld [vmem:[#allocation5 + $0x9c0] sm:$0xff]  ;;  %v206_v3 = vld [vmem:[#allocation5 + $0x388] sm:$0xff] }
  0x25   :  { %90 = vmatpush.msra.mxu0 %v63_v28  ;;  %150 = vmatpush.msra.mxu1 %v112_v33  ;;  %v207_v4 = vld [vmem:[#allocation5 + $0x390] sm:$0xff]  ;;  %v240_v5 = vld [vmem:[#allocation5 + $0x960] sm:$0xff]  ;;  %v241_v6 = vld [vmem:[#allocation5 + $0x968] sm:$0xff] }
  0x26   :  { %170 = vmatpush.msra.mxu2 %v113_v35  ;;  %259 = vmatpush.msra.mxu3 %v210_v58  ;;  %v204_v7 = vld [vmem:[#allocation5 + $0x330] sm:$0xff]  ;;  %v205_v8 = vld [vmem:[#allocation5 + $0x338] sm:$0xff]  ;;  %v238_v9 = vld [vmem:[#allocation5 + $0x908] sm:$0xff] }
  0x27   :  { %91 = vmatpush.msra.mxu0 %v62_v31  ;;  %151 = vmatpush.msra.mxu1 %v110_v36  ;;  %v239_v10 = vld [vmem:[#allocation5 + $0x910] sm:$0xff]  ;;  %v202_v11 = vld [vmem:[#allocation5 + $0x2d8] sm:$0xff]  ;;  %v203_v12 = vld [vmem:[#allocation5 + $0x2e0] sm:$0xff] }
  0x28   :  { %171 = vmatpush.msra.mxu2 %v111_v38  ;;  %260 = vmatpush.msra.mxu3 %v208_v63  ;;  %v236_v13 = vld [vmem:[#allocation5 + $0x8b0] sm:$0xff]  ;;  %v237_v14 = vld [vmem:[#allocation5 + $0x8b8] sm:$0xff]  ;;  %v200_v15 = vld [vmem:[#allocation5 + $0x280] sm:$0xff] }
  0x29   :  { %92 = vmatpush.msra.mxu0 %v61_v34  ;;  %152 = vmatpush.msra.mxu1 %v108_v39  ;;  %v201_v16 = vld [vmem:[#allocation5 + $0x288] sm:$0xff]  ;;  %v234_v17 = vld [vmem:[#allocation5 + $0x858] sm:$0xff]  ;;  %v235_v18 = vld [vmem:[#allocation5 + $0x860] sm:$0xff] }
  0x2a   :  { %172 = vmatpush.msra.mxu2 %v109_v41  ;;  %261 = vmatpush.msra.mxu3 %v206_v3  ;;  %v198_v19 = vld [vmem:[#allocation5 + $0x228] sm:$0xff]  ;;  %v199_v20 = vld [vmem:[#allocation5 + $0x230] sm:$0xff]  ;;  %v232_v21 = vld [vmem:[#allocation5 + $0x800] sm:$0xff] }
  0x2b   :  { %93 = vmatpush.msra.mxu0 %v60_v37  ;;  %153 = vmatpush.msra.mxu1 %v106_v43  ;;  %v233_v22 = vld [vmem:[#allocation5 + $0x808] sm:$0xff]  ;;  %v196_v23 = vld [vmem:[#allocation5 + $0x1d0] sm:$0xff]  ;;  %v197_v24 = vld [vmem:[#allocation5 + $0x1d8] sm:$0xff] }
  0x2c   :  { %173 = vmatpush.msra.mxu2 %v107_v44  ;;  %262 = vmatpush.msra.mxu3 %v204_v7  ;;  %v230_v25 = vld [vmem:[#allocation5 + $0x7a8] sm:$0xff]  ;;  %v231_v26 = vld [vmem:[#allocation5 + $0x7b0] sm:$0xff]  ;;  %v194_v27 = vld [vmem:[#allocation5 + $0x178] sm:$0xff] }
  0x2d   :  { %94 = vmatpush.msra.mxu0 %v59_v40  ;;  %154 = vmatpush.msra.mxu1 %v104_v45  ;;  %v195_v28 = vld [vmem:[#allocation5 + $0x180] sm:$0xff]  ;;  %v193_v30 = vld [vmem:[#allocation5 + $0x128] sm:$0xff]  ;;  %v228_v37 = vld [vmem:[#allocation5 + $0x750] sm:$0xff] }
  0x2e   :  { %95 = vmatmul.f32.vlgmr.msra.gmra.mxu0 %v58_v42  ;;  %174 = vmatpush.msra.mxu2 %v105_v46  ;;  %v192_v29 = vld [vmem:[#allocation5 + $0x120] sm:$0xff]  ;;  %v190_v36 = vld [vmem:[#allocation5 + $0xc8] sm:$0xff]  ;;  %v191_v38 = vld [vmem:[#allocation5 + $0xd0] sm:$0xff] }
  0x2f   :  { %155 = vmatpush.msra.mxu1 %v102_v47  ;;  %276 = vmatpush.msrb.mxu0 %v248_v55  ;;  %v658_v31 = vld [vmem:[#allocation7] ss:$0 sm:$0xff]  ;;  %v229_v39 = vld [vmem:[#allocation5 + $0x758] sm:$0xff]  ;;  %v188_v40 = vld [vmem:[#allocation5 + $0x70] sm:$0xff] }
  0x30   :  { %175 = vmatpush.msra.mxu2 %v103_v48  ;;  %263 = vmatpush.msra.mxu3 %v202_v11  ;;  %v226_v41 = vld [vmem:[#allocation5 + $0x6f8] sm:$0xff]  ;;  %v227_v43 = vld [vmem:[#allocation5 + $0x700] sm:$0xff]  ;;  %v225_v47 = vld [vmem:[#allocation5 + $0x6a8] sm:$0xff] }
  0x31   :  { %296 = vmatpush.msrb.mxu1 %v217_v50  ;;  %277 = vmatpush.msrb.mxu0 %v246_v57  ;;  %v189_v42 = vld [vmem:[#allocation5 + $0x78] sm:$0xff]  ;;  %v224_v45 = vld [vmem:[#allocation5 + $0x6a0] sm:$0xff]  ;;  %v222_v48 = vld [vmem:[#allocation5 + $0x648] sm:$0xff] }
  0x32   :  { %316 = vmatpush.msrb.mxu2 %v249_v56  ;;  %264 = vmatpush.msra.mxu3 %v200_v15  ;;  %v186_v44 = vld [vmem:[#allocation5 + $0x18] sm:$0xff]  ;;  %v187_v46 = vld [vmem:[#allocation5 + $0x20] sm:$0xff]  ;;  %v223_v49 = vld [vmem:[#allocation5 + $0x650] sm:$0xff] }
  0x33   :  { %297 = vmatpush.msrb.mxu1 %v215_v52  ;;  %278 = vmatpush.msrb.mxu0 %v244_v61  ;;  %v220_v50 = vld [vmem:[#allocation5 + $0x5f0] sm:$0xff]  ;;  %v221_v51 = vld [vmem:[#allocation5 + $0x5f8] sm:$0xff]  ;;  %v219_v53 = vld [vmem:[#allocation5 + $0x5a0] sm:$0xff] }
  0x34   :  { %317 = vmatpush.msrb.mxu2 %v247_v60  ;;  %265 = vmatpush.msra.mxu3 %v198_v19  ;;  %v218_v52 = vld [vmem:[#allocation5 + $0x598] sm:$0xff]  ;;  %v373_v56 = vld [vmem:[#allocation5 + $0xad0] sm:$0xff]  ;;  %v355_v58 = vld [vmem:[#allocation5 + $0x4a0] sm:$0xff] }
  0x35   :  { %298 = vmatpush.msrb.mxu1 %v213_v54  ;;  %279 = vmatpush.msrb.mxu0 %v242_v1  ;;  %v357_v54 = vld [vmem:[#allocation5 + $0x550] sm:$0xff]  ;;  %v356_v55 = vld [vmem:[#allocation5 + $0x4f8] sm:$0xff]  ;;  %v354_v60 = vld [vmem:[#allocation5 + $0x448] sm:$0xff] }
  0x36   :  { %318 = vmatpush.msrb.mxu2 %v245_v62  ;;  %266 = vmatpush.msra.mxu3 %v196_v23  ;;  %v372_v57 = vld [vmem:[#allocation5 + $0xa78] sm:$0xff]  ;;  %v370_v61 = vld [vmem:[#allocation5 + $0x9c8] sm:$0xff]  ;;  %v353_v62 = vld [vmem:[#allocation5 + $0x3f0] sm:$0xff] }
  0x37   :  { %299 = vmatpush.msrb.mxu1 %v211_v59  ;;  %280 = vmatpush.msrb.mxu0 %v240_v5  ;;  %v371_v59 = vld [vmem:[#allocation5 + $0xa20] sm:$0xff]  ;;  %v369_v63 = vld [vmem:[#allocation5 + $0x970] sm:$0xff]  ;;  %v368_v1 = vld [vmem:[#allocation5 + $0x918] sm:$0xff] }
  0x38   :  { %319 = vmatpush.msrb.mxu2 %v243_v2  ;;  %267 = vmatpush.msra.mxu3 %v194_v27  ;;  %v351_v2 = vld [vmem:[#allocation5 + $0x340] sm:$0xff]  ;;  %v345_v23 = vld [vmem:[#allocation5 + $0x130] sm:$0xff] }
  0x39   :  { %300 = vmatpush.msrb.mxu1 %v209_v0  ;;  %281 = vmatpush.msrb.mxu0 %v238_v9  ;;  %v352_v0 = vld [vmem:[#allocation5 + $0x398] sm:$0xff]  ;;  %v367_v3 = vld [vmem:[#allocation5 + $0x8c0] sm:$0xff] }
  0x3a   :  { %320 = vmatpush.msrb.mxu2 %v241_v6  ;;  %268 = vmatpush.msra.mxu3 %v192_v29  ;;  %v134_v5 = vld [vmem:[#allocation7 + $0x1] sm:$0x3]  ;;  %v349_v6 = vld [vmem:[#allocation5 + $0x290] sm:$0xff]  ;;  %v342_v29 = vld [vmem:[#allocation5 + $0x28] sm:$0xff] }
  0x3b   :  { %301 = vmatpush.msrb.mxu1 %v207_v4  ;;  %282 = vmatpush.msrb.mxu0 %v236_v13  ;;  %v350_v4 = vld [vmem:[#allocation5 + $0x2e8] sm:$0xff]  ;;  %v136_v7 = vperm.slane %v134_v5, 0  ;;  %v347_v19 = vld [vmem:[#allocation5 + $0x1e0] sm:$0xff] }
  0x3c   :  { %321 = vmatpush.msrb.mxu2 %v239_v10  ;;  %269 = vmatpush.msra.mxu3 %v190_v36  ;;  %v137_v10 = vperm.slane %v134_v5, 1  ;;  %v343_v27 = vld [vmem:[#allocation5 + $0x80] sm:$0xff]  ;;  %v433_v36 = vld [vmem:[#allocation5 + $0x450] sm:$0xff]  ;;  %v474_v5 = vld [vmem:[#allocation5 + $0x3a8] sm:$0xff] }
  0x3d   :  { %302 = vmatpush.msrb.mxu1 %v205_v8  ;;  %283 = vmatpush.msrb.mxu0 %v234_v17  ;;  %v348_v17 = vld [vmem:[#allocation5 + $0x238] sm:$0xff] }
  0x3e   :  { %322 = vmatpush.msrb.mxu2 %v237_v14  ;;  %270 = vmatpush.msra.mxu3 %v188_v40  ;;  %v429_v40 = vld [vmem:[#allocation5 + $0x2f0] sm:$0xff] }
  0x3f   :  { %303 = vmatpush.msrb.mxu1 %v203_v12  ;;  %284 = vmatpush.msrb.mxu0 %v232_v21  ;;  %v346_v21 = vld [vmem:[#allocation5 + $0x188] sm:$0xff] }
  0x40   :  { %323 = vmatpush.msrb.mxu2 %v235_v18  ;;  %271 = vmatpush.msra.mxu3 %v186_v44  ;;  %v366_v18 = vld [vmem:[#allocation5 + $0x868] sm:$0xff] }
  0x41   :  { %304 = vmatpush.msrb.mxu1 %v201_v16  ;;  %285 = vmatpush.msrb.mxu0 %v230_v25  ;;  %v344_v25 = vld [vmem:[#allocation5 + $0xd8] sm:$0xff] }
  0x42   :  { %324 = vmatpush.msrb.mxu2 %v233_v22  ;;  %378 = vmatpush.msrb.mxu3 %v357_v54  ;;  %v364_v22 = vld [vmem:[#allocation5 + $0x7b8] sm:$0xff] }
  0x43   :  { %305 = vmatpush.msrb.mxu1 %v199_v20  ;;  %286 = vmatpush.msrb.mxu0 %v228_v37  ;;  %v365_v20 = vld [vmem:[#allocation5 + $0x810] sm:$0xff]  ;;  %v432_v37 = vld [vmem:[#allocation5 + $0x3f8] sm:$0xff] }
  0x44   :  { %325 = vmatpush.msrb.mxu2 %v231_v26  ;;  %379 = vmatpush.msrb.mxu3 %v356_v55  ;;  %v362_v26 = vld [vmem:[#allocation5 + $0x708] sm:$0xff] }
  0x45   :  { %306 = vmatpush.msrb.mxu1 %v197_v24  ;;  %287 = vmatpush.msrb.mxu0 %v226_v41  ;;  %v363_v24 = vld [vmem:[#allocation5 + $0x760] sm:$0xff]  ;;  %v428_v41 = vld [vmem:[#allocation5 + $0x298] sm:$0xff] }
  0x46   :  { %326 = vmatpush.msrb.mxu2 %v229_v39  ;;  %380 = vmatpush.msrb.mxu3 %v355_v58  ;;  %v430_v39 = vld [vmem:[#allocation5 + $0x348] sm:$0xff] }
  0x47   :  { %307 = vmatpush.msrb.mxu1 %v195_v28  ;;  %288 = vmatpush.msrb.mxu0 %v224_v45  ;;  %v361_v28 = vld [vmem:[#allocation5 + $0x6b0] sm:$0xff]  ;;  %v426_v45 = vld [vmem:[#allocation5 + $0x1e8] sm:$0xff] }
  0x48   :  { %327 = vmatpush.msrb.mxu2 %v227_v43  ;;  %381 = vmatpush.msrb.mxu3 %v354_v60  ;;  %v427_v43 = vld [vmem:[#allocation5 + $0x240] sm:$0xff]  ;;  %v424_v60 = vld [vmem:[#allocation5 + $0x138] sm:$0xff] }
  0x49   :  { %308 = vmatpush.msrb.mxu1 %v193_v30  ;;  %289 = vmatpush.msrb.mxu0 %v222_v48  ;;  %v360_v30 = vld [vmem:[#allocation5 + $0x658] sm:$0xff] }
  0x4a   :  { %328 = vmatpush.msrb.mxu2 %v225_v47  ;;  %382 = vmatpush.msrb.mxu3 %v353_v62  ;;  %v422_v62 = vld [vmem:[#allocation5 + $0x88] sm:$0xff] }
  0x4b   :  { %309 = vmatpush.msrb.mxu1 %v191_v38  ;;  %290 = vmatpush.msrb.mxu0 %v220_v50  ;;  %v431_v38 = vld [vmem:[#allocation5 + $0x3a0] sm:$0xff] }
  0x4c   :  { %329 = vmatpush.msrb.mxu2 %v223_v49  ;;  %383 = vmatpush.msrb.mxu3 %v352_v0  ;;  %v479_v0 = vld [vmem:[#allocation5 + $0x560] sm:$0xff] }
  0x4d   :  { %310 = vmatpush.msrb.mxu1 %v189_v42  ;;  %291 = vmatpush.msrb.mxu0 %v218_v52  ;;  %v250_v42 = vld [vmem:[#allocation7 + $0x3] sm:$0x3] }
  0x4e   :  { %330 = vmatpush.msrb.mxu2 %v221_v51  ;;  %384 = vmatpush.msrb.mxu3 %v351_v2  ;;  %v252_v44 = vperm.slane %v250_v42, 0  ;;  %v253_v47 = vperm.slane %v250_v42, 1  ;;  %v477_v2 = vld [vmem:[#allocation5 + $0x4b0] sm:$0xff]  ;;  %v508_v42 = vld [vmem:[#allocation5 + $0x98] sm:$0xff] }
  0x4f   :  { %311 = vmatpush.msrb.mxu1 %v187_v46  ;;  %398 = vmatpush.msra.mxu0 %v373_v56 }
  0x50   :  { %331 = vmatpush.msrb.mxu2 %v219_v53  ;;  %385 = vmatpush.msrb.mxu3 %v350_v4  ;;  %v475_v4 = vld [vmem:[#allocation5 + $0x400] sm:$0xff] }
  0x51   :  { %399 = vmatpush.msra.mxu0 %v372_v57 }
  0x52   :  { %386 = vmatpush.msrb.mxu3 %v349_v6  ;;  %v473_v6 = vld [vmem:[#allocation5 + $0x350] sm:$0xff] }
  0x53   :  { %400 = vmatpush.msra.mxu0 %v371_v59  ;;  %v425_v59 = vld [vmem:[#allocation5 + $0x190] sm:$0xff] }
  0x54   :  { %387 = vmatpush.msrb.mxu3 %v348_v17 }
  0x55   :  { %401 = vmatpush.msra.mxu0 %v370_v61  ;;  %v423_v61 = vld [vmem:[#allocation5 + $0xe0] sm:$0xff] }
  0x56   :  { %388 = vmatpush.msrb.mxu3 %v347_v19 }
  0x57   :  { %402 = vmatpush.msra.mxu0 %v369_v63  ;;  %v421_v63 = vld [vmem:[#allocation5 + $0x30] sm:$0xff] }
  0x58   :  { %389 = vmatpush.msrb.mxu3 %v346_v21  ;;  %v465_v21 = vld [vmem:[#allocation5 + $0x90] sm:$0xff] }
  0x59   :  { %403 = vmatpush.msra.mxu0 %v368_v1  ;;  %v478_v1 = vld [vmem:[#allocation5 + $0x508] sm:$0xff] }
  0x5a   :  { %390 = vmatpush.msrb.mxu3 %v345_v23  ;;  %v522_v23 = vld [vmem:[#allocation5 + $0x568] sm:$0xff] }
  0x5b   :  { %404 = vmatpush.msra.mxu0 %v367_v3  ;;  %v476_v3 = vld [vmem:[#allocation5 + $0x458] sm:$0xff] }
  0x5c   :  { %391 = vmatpush.msrb.mxu3 %v344_v25  ;;  %v520_v25 = vld [vmem:[#allocation5 + $0x4b8] sm:$0xff] }
  0x5d   :  { %405 = vmatpush.msra.mxu0 %v366_v18 }
  0x5e   :  { %392 = vmatpush.msrb.mxu3 %v343_v27  ;;  %v518_v27 = vld [vmem:[#allocation5 + $0x408] sm:$0xff] }
  0x5f   :  { %406 = vmatpush.msra.mxu0 %v365_v20  ;;  %v466_v20 = vld [vmem:[#allocation5 + $0xe8] sm:$0xff] }
  0x60   :  { %393 = vmatpush.msrb.mxu3 %v342_v29  ;;  %v516_v29 = vld [vmem:[#allocation5 + $0x358] sm:$0xff] }
  0x61   :  { %407 = vmatpush.msra.mxu0 %v364_v22  ;;  %v464_v22 = vld [vmem:[#allocation5 + $0x38] sm:$0xff] }
  0x63   :  { %408 = vmatpush.msra.mxu0 %v363_v24  ;;  %v521_v24 = vld [vmem:[#allocation5 + $0x510] sm:$0xff] }
  0x65   :  { %409 = vmatpush.msra.mxu0 %v362_v26  ;;  %v519_v26 = vld [vmem:[#allocation5 + $0x460] sm:$0xff] }
  0x67   :  { %410 = vmatpush.msra.mxu0 %v361_v28  ;;  %v517_v28 = vld [vmem:[#allocation5 + $0x3b0] sm:$0xff] }
  0x69   :  { %411 = vmatpush.msra.mxu0 %v360_v30  ;;  %v515_v30 = vld [vmem:[#allocation5 + $0x300] sm:$0xff] }
  0xab   :  { %v96_v32 = vpop.f32.mrf.mxu0 }
  0xac   :  { %v97_v33 = vadd.f32 %v658_v31, %v96_v32  ;;  %v359_v31 = vld [vmem:[#allocation5 + $0x600] sm:$0xff]  ;;  %v358_v32 = vld [vmem:[#allocation5 + $0x5a8] sm:$0xff] }
  0xad   :  { %412 = vmatpush.msra.mxu0 %v359_v31  ;;  %v514_v31 = vld [vmem:[#allocation5 + $0x2a8] sm:$0xff] }
  0xae   :  { %vm99_vm0 = vcmp.gt.f32.partialorder %v97_v33, 0.0  ;;  %v100_v34 = vmul.f32 0.01, %v97_v33 }
  0xaf   :  { %413 = vmatpush.msra.mxu0 %v358_v32  ;;  %v513_v32 = vld [vmem:[#allocation5 + $0x250] sm:$0xff] }
  0xb0   :  { %v101_v35 = vsel %vm99_vm0, %v97_v33, %v100_v34  ;;  %v436_v33 = vld [vmem:[#allocation5 + $0x558] sm:$0xff]  ;;  %v435_v34 = vld [vmem:[#allocation5 + $0x500] sm:$0xff] }
  0xb1   :  { %156 = vmatmul.f32.vlgmr.msra.gmra.mxu1 %v101_v35  ;;  %176 = vmatmul.f32.vlgmr.msra.gmra.mxu2 %v101_v35  ;;  %v434_v35 = vld [vmem:[#allocation5 + $0x4a8] sm:$0xff] }
  0xb2   :  { %441 = vmatpush.msra.mxu1 %v436_v33  ;;  %484 = vmatpush.msra.mxu2 %v479_v0  ;;  %v512_v33 = vld [vmem:[#allocation5 + $0x1f8] sm:$0xff]  ;;  %v550_v0 = vld [vmem:[#allocation5 + $0x48] sm:$0xff] }
  0xb4   :  { %442 = vmatpush.msra.mxu1 %v435_v34  ;;  %485 = vmatpush.msra.mxu2 %v478_v1  ;;  %v511_v34 = vld [vmem:[#allocation5 + $0x1a0] sm:$0xff]  ;;  %v608_v1 = vld [vmem:[#allocation5 + $0x578] sm:$0xff] }
  0xb6   :  { %443 = vmatpush.msra.mxu1 %v434_v35  ;;  %486 = vmatpush.msra.mxu2 %v477_v2  ;;  %v510_v35 = vld [vmem:[#allocation5 + $0x148] sm:$0xff]  ;;  %v607_v2 = vld [vmem:[#allocation5 + $0x520] sm:$0xff] }
  0xb8   :  { %444 = vmatpush.msra.mxu1 %v433_v36  ;;  %487 = vmatpush.msra.mxu2 %v476_v3  ;;  %v660_v36 = vld [vmem:[#allocation7 + $0x6] ss:$0 sm:$0xff]  ;;  %v606_v3 = vld [vmem:[#allocation5 + $0x4c8] sm:$0xff] }
  0xba   :  { %445 = vmatpush.msra.mxu1 %v432_v37  ;;  %488 = vmatpush.msra.mxu2 %v475_v4  ;;  %v605_v4 = vld [vmem:[#allocation5 + $0x470] sm:$0xff] }
  0xbc   :  { %446 = vmatpush.msra.mxu1 %v431_v38  ;;  %489 = vmatpush.msra.mxu2 %v474_v5  ;;  %v604_v5 = vld [vmem:[#allocation5 + $0x418] sm:$0xff] }
  0xbe   :  { %447 = vmatpush.msra.mxu1 %v430_v39  ;;  %490 = vmatpush.msra.mxu2 %v473_v6  ;;  %v603_v6 = vld [vmem:[#allocation5 + $0x3c0] sm:$0xff] }
  0xc0   :  { %448 = vmatpush.msra.mxu1 %v429_v40 }
  0xc2   :  { %449 = vmatpush.msra.mxu1 %v428_v41  ;;  %v509_v41 = vld [vmem:[#allocation5 + $0xf0] sm:$0xff] }
  0xc4   :  { %450 = vmatpush.msra.mxu1 %v427_v43  ;;  %v507_v43 = vld [vmem:[#allocation5 + $0x40] sm:$0xff] }
  0xc6   :  { %451 = vmatpush.msra.mxu1 %v426_v45  ;;  %v564_v45 = vld [vmem:[#allocation5 + $0x518] sm:$0xff] }
  0xc8   :  { %452 = vmatpush.msra.mxu1 %v425_v59 }
  0xca   :  { %453 = vmatpush.msra.mxu1 %v424_v60 }
  0xcc   :  { %454 = vmatpush.msra.mxu1 %v423_v61 }
  0xce   :  { %455 = vmatpush.msra.mxu1 %v422_v62  ;;  %v552_v62 = vld [vmem:[#allocation5 + $0xf8] sm:$0xff] }
  0xd0   :  { %456 = vmatpush.msra.mxu1 %v421_v63  ;;  %v551_v63 = vld [vmem:[#allocation5 + $0xa0] sm:$0xff] }
 0x12e   :  { %v157_v8 = vpop.f32.mrf.mxu1 }
 0x12f   :  { %v158_v9 = vadd.f32 %v157_v8, %v136_v7  ;;  %v472_v7 = vld [vmem:[#allocation5 + $0x2f8] sm:$0xff]  ;;  %v471_v8 = vld [vmem:[#allocation5 + $0x2a0] sm:$0xff] }
 0x130   :  { %491 = vmatpush.msra.mxu2 %v472_v7  ;;  %v602_v7 = vld [vmem:[#allocation5 + $0x368] sm:$0xff] }
 0x131   :  { %vm180_vm1 = vcmp.gt.f32.partialorder %v158_v9, 0.0  ;;  %v182_v11 = vmul.f32 0.01, %v158_v9 }
 0x132   :  { %492 = vmatpush.msra.mxu2 %v471_v8  ;;  %v601_v8 = vld [vmem:[#allocation5 + $0x310] sm:$0xff] }
 0x133   :  { %v184_v12 = vsel %vm180_vm1, %v158_v9, %v182_v11  ;;  %v470_v9 = vld [vmem:[#allocation5 + $0x248] sm:$0xff]  ;;  %v468_v11 = vld [vmem:[#allocation5 + $0x198] sm:$0xff] }
 0x134   :  { %v177_v13 = vpop.f32.mrf.mxu2  ;;  %272 = vmatmul.f32.vlgmr.msra.gmra.mxu3 %v184_v12  ;;  %312 = vmatmul.f32.vlgmr.msrb.gmra.mxu1 %v184_v12  ;;  %v659_v12 = vld [vmem:[#allocation7 + $0x5] ss:$0 sm:$0xff] }
 0x135   :  { %v178_v14 = vadd.f32 %v177_v13, %v137_v10  ;;  %v469_v10 = vld [vmem:[#allocation5 + $0x1f0] sm:$0xff]  ;;  %493 = vmatpush.msra.mxu2 %v470_v9  ;;  %v467_v13 = vld [vmem:[#allocation5 + $0x140] sm:$0xff]  ;;  %527 = vmatpush.msra.mxu3 %v522_v23  ;;  %v600_v9 = vld [vmem:[#allocation5 + $0x2b8] sm:$0xff] }
 0x136   :  { %613 = vmatpush.msrb.mxu1 %v608_v1 }
 0x137   :  { %v183_v15 = vmul.f32 0.01, %v178_v14  ;;  %vm181_vm2 = vcmp.gt.f32.partialorder %v178_v14, 0.0  ;;  %494 = vmatpush.msra.mxu2 %v469_v10  ;;  %528 = vmatpush.msra.mxu3 %v521_v24  ;;  %v599_v10 = vld [vmem:[#allocation5 + $0x260] sm:$0xff] }
 0x138   :  { %614 = vmatpush.msrb.mxu1 %v607_v2 }
 0x139   :  { %v185_v16 = vsel %vm181_vm2, %v178_v14, %v183_v15  ;;  %495 = vmatpush.msra.mxu2 %v468_v11  ;;  %529 = vmatpush.msra.mxu3 %v520_v25  ;;  %v598_v11 = vld [vmem:[#allocation5 + $0x208] sm:$0xff] }
 0x13a   :  { %292 = vmatmul.f32.vlgmr.msrb.gmra.mxu0 %v185_v16  ;;  %332 = vmatmul.f32.vlgmr.msrb.gmra.mxu2 %v185_v16 }
 0x13b   :  { %496 = vmatpush.msra.mxu2 %v467_v13  ;;  %530 = vmatpush.msra.mxu3 %v519_v26  ;;  %v596_v13 = vld [vmem:[#allocation5 + $0x158] sm:$0xff] }
 0x13c   :  { %615 = vmatpush.msrb.mxu1 %v606_v3 }
 0x13d   :  { %497 = vmatpush.msra.mxu2 %v466_v20  ;;  %531 = vmatpush.msra.mxu3 %v518_v27  ;;  %v594_v20 = vld [vmem:[#allocation5 + $0xa8] sm:$0xff] }
 0x13e   :  { %616 = vmatpush.msrb.mxu1 %v605_v4  ;;  %v664_v27 = vld [vmem:[#allocation7 + $0xa] ss:$0 sm:$0xff] }
 0x13f   :  { %498 = vmatpush.msra.mxu2 %v465_v21  ;;  %532 = vmatpush.msra.mxu3 %v517_v28  ;;  %v593_v21 = vld [vmem:[#allocation5 + $0x50] sm:$0xff] }
 0x140   :  { %617 = vmatpush.msrb.mxu1 %v604_v5 }
 0x141   :  { %499 = vmatpush.msra.mxu2 %v464_v22  ;;  %533 = vmatpush.msra.mxu3 %v516_v29  ;;  %v663_v22 = vld [vmem:[#allocation7 + $0x9] ss:$0 sm:$0xff] }
 0x142   :  { %618 = vmatpush.msrb.mxu1 %v603_v6 }
 0x143   :  { %534 = vmatpush.msra.mxu3 %v515_v30 }
 0x144   :  { %619 = vmatpush.msrb.mxu1 %v602_v7 }
 0x145   :  { %535 = vmatpush.msra.mxu3 %v514_v31 }
 0x146   :  { %620 = vmatpush.msrb.mxu1 %v601_v8 }
 0x147   :  { %536 = vmatpush.msra.mxu3 %v513_v32 }
 0x148   :  { %621 = vmatpush.msrb.mxu1 %v600_v9 }
 0x149   :  { %537 = vmatpush.msra.mxu3 %v512_v33 }
 0x14a   :  { %622 = vmatpush.msrb.mxu1 %v599_v10 }
 0x14b   :  { %538 = vmatpush.msra.mxu3 %v511_v34 }
 0x14c   :  { %623 = vmatpush.msrb.mxu1 %v598_v11 }
 0x14d   :  { %539 = vmatpush.msra.mxu3 %v510_v35 }
 0x14f   :  { %540 = vmatpush.msra.mxu3 %v509_v41 }
 0x151   :  { %541 = vmatpush.msra.mxu3 %v508_v42 }
 0x153   :  { %542 = vmatpush.msra.mxu3 %v507_v43 }
 0x1b1   :  { %v313_v49 = vpop.f32.mrf.mxu1 }
 0x1b2   :  { %v314_v52 = vadd.f32 %v313_v49, %v253_v47  ;;  %v562_v47 = vld [vmem:[#allocation5 + $0x468] sm:$0xff]  ;;  %v560_v49 = vld [vmem:[#allocation5 + $0x3b8] sm:$0xff] }
 0x1b7   :  { %v273_v46 = vpop.f32.mrf.mxu3  ;;  %v293_v50 = vpop.f32.mrf.mxu0 }
 0x1b8   :  { %v274_v48 = vadd.f32 %v273_v46, %v252_v44  ;;  %v565_v44 = vld [vmem:[#allocation5 + $0x570] sm:$0xff]  ;;  %v563_v46 = vld [vmem:[#allocation5 + $0x4c0] sm:$0xff] }
 0x1b9   :  { %570 = vmatpush.msrb.mxu0 %v565_v44 }
 0x1ba   :  { %v294_v51 = vadd.f32 %v293_v50, %v274_v48  ;;  %v561_v48 = vld [vmem:[#allocation5 + $0x410] sm:$0xff]  ;;  %v559_v50 = vld [vmem:[#allocation5 + $0x360] sm:$0xff] }
 0x1bb   :  { %571 = vmatpush.msrb.mxu0 %v564_v45 }
 0x1bc   :  { %v338_v53 = vmul.f32 0.01, %v294_v51  ;;  %vm336_vm3 = vcmp.gt.f32.partialorder %v294_v51, 0.0 }
 0x1bd   :  { %v333_v54 = vpop.f32.mrf.mxu2  ;;  %572 = vmatpush.msrb.mxu0 %v563_v46 }
 0x1be   :  { %v334_v55 = vadd.f32 %v333_v54, %v314_v52  ;;  %v340_v56 = vsel %vm336_vm3, %v294_v51, %v338_v53  ;;  %v558_v51 = vld [vmem:[#allocation5 + $0x308] sm:$0xff]  ;;  %v557_v52 = vld [vmem:[#allocation5 + $0x2b0] sm:$0xff]  ;;  %v556_v53 = vld [vmem:[#allocation5 + $0x258] sm:$0xff] }
 0x1bf   :  { %394 = vmatmul.f32.vlgmr.msrb.gmra.mxu3 %v340_v56  ;;  %573 = vmatpush.msrb.mxu0 %v562_v47  ;;  %v555_v54 = vld [vmem:[#allocation5 + $0x200] sm:$0xff]  ;;  %v553_v56 = vld [vmem:[#allocation5 + $0x150] sm:$0xff] }
 0x1c0   :  { %vm337_vm4 = vcmp.gt.f32.partialorder %v334_v55, 0.0  ;;  %v339_v57 = vmul.f32 0.01, %v334_v55 }
 0x1c1   :  { %574 = vmatpush.msrb.mxu0 %v561_v48 }
 0x1c2   :  { %v341_v58 = vsel %vm337_vm4, %v334_v55, %v339_v57  ;;  %v554_v55 = vld [vmem:[#allocation5 + $0x1a8] sm:$0xff]  ;;  %v661_v57 = vld [vmem:[#allocation7 + $0x7] ss:$0 sm:$0xff] }
 0x1c3   :  { %414 = vmatmul.f32.vlgmr.msra.gmra.mxu0 %v341_v58 }
 0x1c4   :  { %575 = vmatpush.msrb.mxu0 %v560_v49 }
 0x1c6   :  { %576 = vmatpush.msrb.mxu0 %v559_v50 }
 0x1c8   :  { %577 = vmatpush.msrb.mxu0 %v558_v51 }
 0x1ca   :  { %578 = vmatpush.msrb.mxu0 %v557_v52 }
 0x1cc   :  { %579 = vmatpush.msrb.mxu0 %v556_v53 }
 0x1ce   :  { %580 = vmatpush.msrb.mxu0 %v555_v54 }
 0x1d0   :  { %581 = vmatpush.msrb.mxu0 %v554_v55 }
 0x1d2   :  { %582 = vmatpush.msrb.mxu0 %v553_v56 }
 0x1d4   :  { %583 = vmatpush.msrb.mxu0 %v552_v62 }
 0x1d6   :  { %584 = vmatpush.msrb.mxu0 %v551_v63 }
 0x1d8   :  { %585 = vmatpush.msrb.mxu0 %v550_v0 }
 0x240   :  { %v415_v16 = vpop.f32.mrf.mxu0 }
 0x242   :  { %v395_v14 = vpop.f32.mrf.mxu3 }
 0x243   :  { %v396_v15 = vadd.f32 %v659_v12, %v395_v14  ;;  %v597_v12 = vld [vmem:[#allocation5 + $0x1b0] sm:$0xff]  ;;  %v662_v14 = vld [vmem:[#allocation7 + $0x8] ss:$0 sm:$0xff] }
 0x244   :  { %624 = vmatpush.msrb.mxu1 %v597_v12 }
 0x245   :  { %v416_v17 = vadd.f32 %v415_v16, %v396_v15 }
 0x246   :  { %625 = vmatpush.msrb.mxu1 %v596_v13 }
 0x247   :  { %v419_v18 = vmul.f32 0.01, %v416_v17  ;;  %vm418_vm5 = vcmp.gt.f32.partialorder %v416_v17, 0.0 }
 0x249   :  { %v420_v19 = vsel %vm418_vm5, %v416_v17, %v419_v18 }
 0x24a   :  { %457 = vmatmul.f32.vlgmr.msra.gmra.mxu1 %v420_v19  ;;  %v595_v19 = vld [vmem:[#allocation5 + $0x100] sm:$0xff] }
 0x24b   :  { %626 = vmatpush.msrb.mxu1 %v595_v19 }
 0x24d   :  { %627 = vmatpush.msrb.mxu1 %v594_v20 }
 0x24f   :  { %628 = vmatpush.msrb.mxu1 %v593_v21 }
 0x2c7   :  { %v458_v37 = vpop.f32.mrf.mxu1 }
 0x2c8   :  { %v459_v38 = vadd.f32 %v660_v36, %v458_v37 }
 0x2ca   :  { %vm461_vm6 = vcmp.gt.f32.partialorder %v459_v38, 0.0  ;;  %v462_v39 = vmul.f32 0.01, %v459_v38 }
 0x2cc   :  { %v463_v40 = vsel %vm461_vm6, %v459_v38, %v462_v39 }
 0x2cd   :  { %500 = vmatmul.f32.vlgmr.msra.gmra.mxu2 %v463_v40 }
 0x350   :  { %v501_v58 = vpop.f32.mrf.mxu2 }
 0x351   :  { %v502_v59 = vadd.f32 %v661_v57, %v501_v58 }
 0x353   :  { %vm504_vm7 = vcmp.gt.f32.partialorder %v502_v59, 0.0  ;;  %v505_v60 = vmul.f32 0.01, %v502_v59 }
 0x355   :  { %v506_v61 = vsel %vm504_vm7, %v502_v59, %v505_v60 }
 0x356   :  { %543 = vmatmul.f32.vlgmr.msra.gmra.mxu3 %v506_v61 }
 0x3d9   :  { %v544_v15 = vpop.f32.mrf.mxu3 }
 0x3da   :  { %v545_v16 = vadd.f32 %v662_v14, %v544_v15 }
 0x3dc   :  { %vm547_vm8 = vcmp.gt.f32.partialorder %v545_v16, 0.0  ;;  %v548_v17 = vmul.f32 0.01, %v545_v16 }
 0x3de   :  { %v549_v18 = vsel %vm547_vm8, %v545_v16, %v548_v17 }
 0x3df   :  { %586 = vmatmul.f32.vlgmr.msrb.gmra.mxu0 %v549_v18 }
 0x45c   :  { %v587_v23 = vpop.f32.mrf.mxu0 }
 0x45d   :  { %v588_v24 = vadd.f32 %v663_v22, %v587_v23 }
 0x45f   :  { %vm590_vm9 = vcmp.gt.f32.partialorder %v588_v24, 0.0  ;;  %v591_v25 = vmul.f32 0.01, %v588_v24 }
 0x461   :  { %v592_v26 = vsel %vm590_vm9, %v588_v24, %v591_v25 }
 0x462   :  { %629 = vmatmul.f32.vlgmr.msrb.gmra.mxu1 %v592_v26 }
 0x4df   :  { %v630_v28 = vpop.f32.mrf.mxu1 }
 0x4e0   :  { %v631_v29 = vadd.f32 %v664_v27, %v630_v28 }
 0x4e2   :  { %633 = vst [vmem:[#allocation8] sm:$0xff] %v631_v29 }
 0x4e3   :  { %644 = dma.vmem_to_hbm [thread:$0]  %s640_s2, 128, %s642_s30, [#allocation4]  }
 0x4e4   :  { %765 = dma.done.wait [#allocation4], 128  }
 0x4e5   :  { %766 = vsyncadd [#allocation4], 4294967168 }
 0x4e6   :  { %649 = vsyncpa [#allocation3], 1 }
 0x4e7   :  { %650 = vsyncpa [#allocation6], 1 }
 0x4e8   :  { %651 = vsyncpa [#allocation4], 1 }

</bundles_post_ra>
